<compile_context>
chip_gen: v7x
topology: tpu7x:2x2x1
jax: 0.10.0
libtpu: 0.0.40
codegen_flags: <defaults>
</compile_context>

<pallas_src>
import jax
import jax.numpy as jnp
from jax.experimental import pallas as pl
from jax.experimental.pallas import tpu as pltpu

_LANE = 128   # TPU lane width: mean_layer weights are padded to this many output lanes


def _round_up(x, m):
    return ((x + m - 1) // m) * m


def actor_discrete_kernel(s_ref, w1_ref, b1_ref, w2_ref, b2_ref,
                          w3_ref, b3_ref, out_ref):
    """One batch tile: fc1 -> tanh -> fc2 -> tanh -> mean_layer -> softmax."""
    # fc1 + tanh   (bf16 MXU matmul, f32 accumulation; activation math in f32)
    h1 = jnp.tanh(
        jnp.dot(s_ref[...], w1_ref[...], preferred_element_type=jnp.float32)
        + b1_ref[...]
    )
    # fc2 + tanh
    h2 = jnp.tanh(
        jnp.dot(h1.astype(jnp.bfloat16), w2_ref[...],
                preferred_element_type=jnp.float32)
        + b2_ref[...]
    )
    # mean_layer: lane-dense (128-wide) matmul, then slice to the real logits.
    logits_full = (
        jnp.dot(h2.astype(jnp.bfloat16), w3_ref[...],
                preferred_element_type=jnp.float32)
        + b3_ref[...]
    )
    action_dim = out_ref.shape[-1]
    logits = logits_full[:, :action_dim]
    # Numerically-stable softmax over the real action lanes only, exact divide
    # (kernel is DMA-bound, so the exact normalization is free and keeps
    # per-row probability sums exact to f32 for downstream log-probs/ratios).
    m = jnp.max(logits, axis=-1, keepdims=True)
    e = jnp.exp(logits - m)
    out_ref[...] = e / jnp.sum(e, axis=-1, keepdims=True)


def prepare_params(params):
    """One-time per-parameter-set prep (hoisted out of the forward path).

    Returns (w1_bf16, b1_f32, w2_bf16, b2_f32, w3_padded_bf16, b3_padded_f32,
    action_dim).  w3/b3 are padded to 128 output lanes with zeros so the final
    matmul / bias add are lane-dense; the kernel slices back to action_dim.
    """
    w1, b1, w2, b2, w3, b3 = params
    hidden = w1.shape[1]
    action_dim = w3.shape[1]
    w3p = jnp.zeros((hidden, _LANE), jnp.float32).at[:, :action_dim].set(w3)
    b3p = jnp.zeros((1, _LANE), jnp.float32).at[:, :action_dim].set(b3)
    return (w1.astype(jnp.bfloat16), b1,
            w2.astype(jnp.bfloat16), b2,
            w3p.astype(jnp.bfloat16), b3p,
            action_dim)


def actor_discrete_forward(s, prepared, tile_b=2048):
    """s: [B, state_dim + 1] float32 -> a_probs: [B, action_dim] float32."""
    w1, b1, w2, b2, w3p, b3p, action_dim = prepared
    B, in_dim = s.shape
    hidden = w1.shape[1]

    # ---- Batch tiling.
    # Pad rows only to the sublane multiple (8), then pick a tile size that:
    #  * is large (default up to 2048) to amortize per-grid-step overhead,
    #  * gives >=2 grid steps when the batch allows it, so v7x's two
    #    TensorCores can each take tiles ("parallel" semantics),
    #  * is rebalanced across tiles so padding stays a few sublane rows, never
    #    ~tile_b rows for unlucky B.
    b8 = _round_up(max(B, 1), 8)
    tile = min(tile_b, b8)
    if b8 >= 16:
        tile = min(tile, _round_up(pl.cdiv(b8, 2), 8))
    num_tiles = pl.cdiv(b8, tile)
    tile = _round_up(pl.cdiv(b8, num_tiles), 8)   # rebalance: bounded padding
    b_padded = num_tiles * tile

    # bf16 state halves the dominant input DMA bytes; padded rows (zeros) are
    # numerically benign and sliced off below.
    s_bf = s.astype(jnp.bfloat16)
    if b_padded != B:
        s_bf = jnp.pad(s_bf, ((0, b_padded - B), (0, 0)))

    # This kernel is HBM/overhead bound, not compute bound -- advertise that.
    weight_bytes = (w1.size + w2.size + w3p.size) * 2 + (b1.size + b2.size + b3p.size) * 4
    cost = pl.CostEstimate(
        flops=2 * b_padded * (in_dim * hidden + hidden * hidden + hidden * _LANE),
        transcendentals=b_padded * (2 * hidden + action_dim),
        bytes_accessed=b_padded * (in_dim * 2 + action_dim * 4) + weight_bytes,
    )

    resident = lambda i: (0, 0)   # weights/biases stay VMEM-resident across the grid
    out = pl.pallas_call(
        actor_discrete_kernel,
        out_shape=jax.ShapeDtypeStruct((b_padded, action_dim), jnp.float32),
        grid=(num_tiles,),
        in_specs=[
            pl.BlockSpec((tile, in_dim), lambda i: (i, 0)),    # state tile
            pl.BlockSpec((in_dim, hidden), resident),          # w1
            pl.BlockSpec((1, hidden), resident),               # b1
            pl.BlockSpec((hidden, hidden), resident),          # w2
            pl.BlockSpec((1, hidden), resident),               # b2
            pl.BlockSpec((hidden, _LANE), resident),           # w3 (lane-padded)
            pl.BlockSpec((1, _LANE), resident),                # b3 (lane-padded)
        ],
        out_specs=pl.BlockSpec((tile, action_dim), lambda i: (i, 0)),  # narrow output
        compiler_params=pltpu.CompilerParams(
            dimension_semantics=("parallel",)),
        cost_estimate=cost,
    )(s_bf, w1, b1, w2, b2, w3p, b3p)

    return out if b_padded == B else out[:B]


def init_params(key, state_dim, hidden_width, action_dim):
    """Deterministic orthogonal init matching the PyTorch module's __init__."""
    k1, k2, k3 = jax.random.split(key, 3)
    ortho_07 = jax.nn.initializers.orthogonal(scale=0.7)
    ortho_001 = jax.nn.initializers.orthogonal(scale=0.01)
    in_dim = state_dim + 1
    # Stored as [in_features, out_features] (transposed vs torch Linear.weight).
    w1 = ortho_07(k1, (in_dim, hidden_width), jnp.float32)
    w2 = ortho_07(k2, (hidden_width, hidden_width), jnp.float32)
    w3 = ortho_001(k3, (hidden_width, action_dim), jnp.float32)
    b1 = jnp.zeros((1, hidden_width), jnp.float32)
    b2 = jnp.zeros((1, hidden_width), jnp.float32)
    b3 = jnp.zeros((1, action_dim), jnp.float32)
    return (w1, b1, w2, b2, w3, b3)


def reference_forward(s, params):
    """Plain-JAX f32 reference for correctness checking."""
    w1, b1, w2, b2, w3, b3 = params
    h1 = jnp.tanh(s @ w1 + b1)
    h2 = jnp.tanh(h1 @ w2 + b2)
    logits = h2 @ w3 + b3
    return jax.nn.softmax(logits, axis=-1)


if __name__ == "__main__":
    # Small shapes consistent with the module: state_dim=7 (+1 -> 8 input
    # features), hidden_width=32, action_dim=4.
    state_dim = 7
    hidden_width = 32
    action_dim = 4

    key = jax.random.PRNGKey(0)
    k_params, k_in1, k_in2 = jax.random.split(key, 3)
    params = init_params(k_params, state_dim, hidden_width, action_dim)
    prepared = prepare_params(params)   # hoisted: done once, reused per forward

    # bf16 MXU operands introduce ~1e-3-level error vs. the pure-f32 reference;
    # softmax normalization itself is now exact (f32 divide).
    ATOL, RTOL = 5e-3, 1e-2

    # Case 1: batch = 8 (single tile, no padding).
    s = jax.random.normal(k_in1, (8, state_dim + 1), dtype=jnp.float32)
    a_probs = jax.block_until_ready(actor_discrete_forward(s, prepared))
    ref = reference_forward(s, params)
    assert a_probs.shape == (8, action_dim)
    assert jnp.allclose(jnp.sum(a_probs, axis=-1), 1.0, atol=1e-5)
    assert jnp.allclose(a_probs, ref, atol=ATOL, rtol=RTOL)

    # Case 2: batch = 10 (exercises row padding and the multi-tile grid path).
    s2 = jax.random.normal(k_in2, (10, state_dim + 1), dtype=jnp.float32)
    a_probs2 = jax.block_until_ready(actor_discrete_forward(s2, prepared))
    ref2 = reference_forward(s2, params)
    assert a_probs2.shape == (10, action_dim)
    assert jnp.allclose(jnp.sum(a_probs2, axis=-1), 1.0, atol=1e-5)
    assert jnp.allclose(a_probs2, ref2, atol=ATOL, rtol=RTOL)

    print("KERNEL_OK")
</pallas_src>

<mosaic_0001>
module attributes {stable_mosaic.version = 11 : i64} {
  func.func @actor_discrete_kernel(%arg0: i32, %arg1: memref<8x8xbf16, #tpu.memory_space<vmem>>, %arg2: memref<8x32xbf16, #tpu.memory_space<vmem>>, %arg3: memref<1x32xf32, #tpu.memory_space<vmem>>, %arg4: memref<32x32xbf16, #tpu.memory_space<vmem>>, %arg5: memref<1x32xf32, #tpu.memory_space<vmem>>, %arg6: memref<32x128xbf16, #tpu.memory_space<vmem>>, %arg7: memref<1x128xf32, #tpu.memory_space<vmem>>, %arg8: memref<8x4xf32, #tpu.memory_space<vmem>>) attributes {dimension_semantics = [#tpu.dimension_semantics<parallel>], iteration_bounds = array<i64: 1>, scalar_prefetch = 0 : i64, scratch_operands = 0 : i64, tpu.core_type = #tpu.core_type<tc>, window_params = [{transform_indices = @transform_0, window_bounds = array<i64: 8, 8>}, {pipeline_mode = #tpu.pipeline_mode<synchronous>, transform_indices = @transform_1, window_bounds = array<i64: 8, 32>}, {pipeline_mode = #tpu.pipeline_mode<synchronous>, transform_indices = @transform_2, window_bounds = array<i64: 1, 32>}, {pipeline_mode = #tpu.pipeline_mode<synchronous>, transform_indices = @transform_3, window_bounds = array<i64: 32, 32>}, {pipeline_mode = #tpu.pipeline_mode<synchronous>, transform_indices = @transform_4, window_bounds = array<i64: 1, 32>}, {pipeline_mode = #tpu.pipeline_mode<synchronous>, transform_indices = @transform_5, window_bounds = array<i64: 32, 128>}, {pipeline_mode = #tpu.pipeline_mode<synchronous>, transform_indices = @transform_6, window_bounds = array<i64: 1, 128>}, {transform_indices = @transform_7, window_bounds = array<i64: 8, 4>}]} {
    %c0 = arith.constant 0 : index
    %c0_0 = arith.constant 0 : index
    %0 = vector.load %arg1[%c0, %c0_0] : memref<8x8xbf16, #tpu.memory_space<vmem>>, vector<8x8xbf16>
    %c0_1 = arith.constant 0 : index
    %c0_2 = arith.constant 0 : index
    %1 = vector.load %arg2[%c0_1, %c0_2] : memref<8x32xbf16, #tpu.memory_space<vmem>>, vector<8x32xbf16>
    %cst = arith.constant dense<0.000000e+00> : vector<8x32xf32>
    %2 = tpu.matmul %0, %1, %cst {dimension_numbers = #tpu.dot_dimension_numbers<[1], [0], [0], [1], [0, 0, 1, 1], [], []>} : vector<8x8xbf16>, vector<8x32xbf16>, vector<8x32xf32> -> vector<8x32xf32>
    %c0_3 = arith.constant 0 : index
    %c0_4 = arith.constant 0 : index
    %3 = vector.load %arg3[%c0_3, %c0_4] : memref<1x32xf32, #tpu.memory_space<vmem>>, vector<1x32xf32>
    %4 = vector.broadcast %3 : vector<1x32xf32> to vector<8x32xf32>
    %5 = arith.addf %2, %4 : vector<8x32xf32>
    %6 = math.tanh %5 : vector<8x32xf32>
    %7 = arith.truncf %6 : vector<8x32xf32> to vector<8x32xbf16>
    %c0_5 = arith.constant 0 : index
    %c0_6 = arith.constant 0 : index
    %8 = vector.load %arg4[%c0_5, %c0_6] : memref<32x32xbf16, #tpu.memory_space<vmem>>, vector<32x32xbf16>
    %cst_7 = arith.constant dense<0.000000e+00> : vector<8x32xf32>
    %9 = tpu.matmul %7, %8, %cst_7 {dimension_numbers = #tpu.dot_dimension_numbers<[1], [0], [0], [1], [0, 0, 1, 1], [], []>} : vector<8x32xbf16>, vector<32x32xbf16>, vector<8x32xf32> -> vector<8x32xf32>
    %c0_8 = arith.constant 0 : index
    %c0_9 = arith.constant 0 : index
    %10 = vector.load %arg5[%c0_8, %c0_9] : memref<1x32xf32, #tpu.memory_space<vmem>>, vector<1x32xf32>
    %11 = vector.broadcast %10 : vector<1x32xf32> to vector<8x32xf32>
    %12 = arith.addf %9, %11 : vector<8x32xf32>
    %13 = math.tanh %12 : vector<8x32xf32>
    %14 = arith.truncf %13 : vector<8x32xf32> to vector<8x32xbf16>
    %c0_10 = arith.constant 0 : index
    %c0_11 = arith.constant 0 : index
    %15 = vector.load %arg6[%c0_10, %c0_11] : memref<32x128xbf16, #tpu.memory_space<vmem>>, vector<32x128xbf16>
    %cst_12 = arith.constant dense<0.000000e+00> : vector<8x128xf32>
    %16 = tpu.matmul %14, %15, %cst_12 {dimension_numbers = #tpu.dot_dimension_numbers<[1], [0], [0], [1], [0, 0, 1, 1], [], []>} : vector<8x32xbf16>, vector<32x128xbf16>, vector<8x128xf32> -> vector<8x128xf32>
    %c0_13 = arith.constant 0 : index
    %c0_14 = arith.constant 0 : index
    %17 = vector.load %arg7[%c0_13, %c0_14] : memref<1x128xf32, #tpu.memory_space<vmem>>, vector<1x128xf32>
    %18 = vector.broadcast %17 : vector<1x128xf32> to vector<8x128xf32>
    %19 = arith.addf %16, %18 : vector<8x128xf32>
    %20 = vector.extract_strided_slice %19 {offsets = [0, 0], sizes = [8, 4], strides = [1, 1]} : vector<8x128xf32> to vector<8x4xf32>
    %cst_15 = arith.constant dense<0xFF800000> : vector<8xf32>
    %21 = vector.multi_reduction <maximumf>, %20, %cst_15 [1] : vector<8x4xf32> to vector<8xf32>
    %22 = vector.shape_cast %21 : vector<8xf32> to vector<8x1xf32>
    %23 = vector.broadcast %22 : vector<8x1xf32> to vector<8x4xf32>
    %24 = arith.subf %20, %23 : vector<8x4xf32>
    %25 = math.exp %24 : vector<8x4xf32>
    %cst_16 = arith.constant dense<0.000000e+00> : vector<8xf32>
    %26 = vector.multi_reduction <add>, %25, %cst_16 [1] : vector<8x4xf32> to vector<8xf32>
    %27 = vector.shape_cast %26 : vector<8xf32> to vector<8x1xf32>
    %28 = vector.broadcast %27 : vector<8x1xf32> to vector<8x4xf32>
    %29 = arith.divf %25, %28 : vector<8x4xf32>
    %c0_17 = arith.constant 0 : index
    %c0_18 = arith.constant 0 : index
    %30 = vector.load %arg8[%c0_17, %c0_18] : memref<8x4xf32, #tpu.memory_space<vmem>>, vector<8x4xf32>
    tpu.vector_store %arg8[%c0_17, %c0_18], %29 {strides = array<i32>} : memref<8x4xf32, #tpu.memory_space<vmem>>, vector<8x4xf32>,
    return
  }
  func.func @transform_0(%arg0: i32) -> (i32, i32) {
    %c0_i32 = arith.constant 0 : i32
    %c0_i32_0 = arith.constant 0 : i32
    return %arg0, %c0_i32 : i32, i32
  }
  func.func @transform_1(%arg0: i32) -> (i32, i32) {
    %c0_i32 = arith.constant 0 : i32
    %c0_i32_0 = arith.constant 0 : i32
    %c0_i32_1 = arith.constant 0 : i32
    return %c0_i32, %c0_i32_0 : i32, i32
  }
  func.func @transform_2(%arg0: i32) -> (i32, i32) {
    %c0_i32 = arith.constant 0 : i32
    %c0_i32_0 = arith.constant 0 : i32
    %c0_i32_1 = arith.constant 0 : i32
    return %c0_i32, %c0_i32_0 : i32, i32
  }
  func.func @transform_3(%arg0: i32) -> (i32, i32) {
    %c0_i32 = arith.constant 0 : i32
    %c0_i32_0 = arith.constant 0 : i32
    %c0_i32_1 = arith.constant 0 : i32
    return %c0_i32, %c0_i32_0 : i32, i32
  }
  func.func @transform_4(%arg0: i32) -> (i32, i32) {
    %c0_i32 = arith.constant 0 : i32
    %c0_i32_0 = arith.constant 0 : i32
    %c0_i32_1 = arith.constant 0 : i32
    return %c0_i32, %c0_i32_0 : i32, i32
  }
  func.func @transform_5(%arg0: i32) -> (i32, i32) {
    %c0_i32 = arith.constant 0 : i32
    %c0_i32_0 = arith.constant 0 : i32
    %c0_i32_1 = arith.constant 0 : i32
    return %c0_i32, %c0_i32_0 : i32, i32
  }
  func.func @transform_6(%arg0: i32) -> (i32, i32) {
    %c0_i32 = arith.constant 0 : i32
    %c0_i32_0 = arith.constant 0 : i32
    %c0_i32_1 = arith.constant 0 : i32
    return %c0_i32, %c0_i32_0 : i32, i32
  }
  func.func @transform_7(%arg0: i32) -> (i32, i32) {
    %c0_i32 = arith.constant 0 : i32
    %c0_i32_0 = arith.constant 0 : i32
    return %arg0, %c0_i32 : i32, i32
  }
}

</mosaic_0001>

<bundles_post_ra>
// kernel: tpu_custom_call.1
= control target key start
LH: loop header
LB: loop body
LE: loop exit
PB: predicated region body
PF: predicated region fallthrough
CT: control target
= control target key end

     0   :  { %12 = vsyncpa [#allocation3], 0  ;;  %s512_s0 = inlined_call_operand.hbm [shape: bf16[8,8], index: 0, kind: input, shape index: {}]   ;;  %s513_s1 = inlined_call_operand.hbm [shape: bf16[8,32], index: 1, kind: input, shape index: {}]   ;;  %s514_s2 = inlined_call_operand.vmem [shape: f32[1,32], index: 2, kind: input, shape index: {}]   ;;  %s515_s3 = inlined_call_operand.hbm [shape: bf16[32,32], index: 3, kind: input, shape index: {}]   ;;  %s516_s4 = inlined_call_operand.vmem [shape: f32[1,32], index: 4, kind: input, shape index: {}]   ;;  %s517_s5 = inlined_call_operand.vmem [shape: bf16[32,128], index: 5, kind: input, shape index: {}]   ;;  %s518_s6 = inlined_call_operand.vmem [shape: f32[1,128], index: 6, kind: input, shape index: {}]   ;;  %s519_s7 = inlined_call_operand.vmem [shape: f32[8,4], index: 7, kind: output, shape index: {}]  }
   0x1   :  { %13 = vsyncpa [#allocation5], 0  ;;  %s406_s24 = smov [#allocation4]   ;;  %s407_s26 = smov [#allocation2]  }
   0x2   :  { %s30_s25 = sshll.u32 %s406_s24, 4  ;;  %s20_s27 = sshll.u32 %s407_s26, 4  ;;  %s31_s25 = int_to_ptr.vmem [resolvable:$true] %s30_s25  ;;  %s21_s27 = int_to_ptr.vmem [resolvable:$true] %s20_s27 }
   0x3   :  { %s336_s30 = scalar_lea.hbm %s513_s1, 64 }
   0x4   :  { %p337_p0 = scmp.ne.s32.totalorder %s513_s1, %s336_s30  ;;  %p340_p1 = scmp.lt.u32.totalorder %s336_s30, %s513_s1 }
   0x6   :  { %p342_p2 = pnand %p340_p1, %p337_p0 }
   0x8   :  { %345 = shalt.err (!%p342_p2)
}
   0x9   :  { %s346_s12 = scalar_lea.vmem %s31_s25, 64  ;;  %p351_p4 = scmp.lt.s32.totalorder %s31_s25, %s31_s25 }
   0xa   :  { %p347_p3 = scmp.ne.s32.totalorder %s31_s25, %s346_s12  ;;  %p352_p5 = scmp.lt.s32.totalorder %s346_s12, %s346_s12 }
   0xc   :  { %p353_p6 = por %p352_p5, %p351_p4 }
   0xe   :  { %p354_p7 = pnand %p353_p6, %p347_p3 }
  0x10   :  { %357 = shalt.err (!%p354_p7)
}
  0x11   :  { %33 = dma.hbm_to_vmem [thread:$0]  %s513_s1, 64, %s31_s25, [#allocation5]  }
  0x12   :  { %s358_s17 = scalar_lea.hbm %s512_s0, 64 }
  0x13   :  { %p359_p8 = scmp.ne.s32.totalorder %s512_s0, %s358_s17  ;;  %p362_p9 = scmp.lt.u32.totalorder %s358_s17, %s512_s0 }
  0x15   :  { %p364_p10 = pnand %p362_p9, %p359_p8 }
  0x17   :  { %367 = shalt.err (!%p364_p10)
}
  0x18   :  { %s368_s22 = scalar_lea.vmem %s21_s27, 64  ;;  %p373_p12 = scmp.lt.s32.totalorder %s21_s27, %s21_s27 }
  0x19   :  { %p369_p11 = scmp.ne.s32.totalorder %s21_s27, %s368_s22  ;;  %p374_p13 = scmp.lt.s32.totalorder %s368_s22, %s368_s22 }
  0x1b   :  { %p375_p0 = por %p374_p13, %p373_p12 }
  0x1d   :  { %p376_p1 = pnand %p375_p0, %p369_p11 }
  0x1f   :  { %379 = shalt.err (!%p376_p1)
}
  0x20   :  { %23 = dma.hbm_to_vmem [thread:$0]  %s512_s0, 64, %s21_s27, [#allocation3]  }
  0x21   :  { %s408_s24 = smov [#allocation6]   ;;  %s380_s29 = scalar_lea.hbm %s515_s3, 256 }
  0x22   :  { %s41_s25 = sshll.u32 %s408_s24, 4  ;;  %p381_p2 = scmp.ne.s32.totalorder %s515_s3, %s380_s29  ;;  %s42_s25 = int_to_ptr.vmem [resolvable:$true] %s41_s25 }
  0x23   :  { %p384_p3 = scmp.lt.u32.totalorder %s380_s29, %s515_s3 }
  0x25   :  { %p386_p4 = pnand %p384_p3, %p381_p2 }
  0x27   :  { %389 = shalt.err (!%p386_p4)
}
  0x28   :  { %s390_s11 = scalar_lea.vmem %s42_s25, 256  ;;  %p395_p6 = scmp.lt.s32.totalorder %s42_s25, %s42_s25 }
  0x29   :  { %p391_p5 = scmp.ne.s32.totalorder %s42_s25, %s390_s11  ;;  %p396_p7 = scmp.lt.s32.totalorder %s390_s11, %s390_s11 }
  0x2b   :  { %p397_p8 = por %p396_p7, %p395_p6 }
  0x2d   :  { %p398_p9 = pnand %p397_p8, %p391_p5 }
  0x2f   :  { %401 = shalt.err (!%p398_p9)
}
  0x30   :  { %s409_s0 = smov 64   ;;  %s410_s27 = smov 4  }
  0x31   :  { %47 = dma.hbm_to_vmem [thread:$0]  %s515_s3, 256, %s42_s25, [#allocation5], %s409_s0, %s409_s0, %s410_s27  }
  0x32   :  { %402 = dma.done.wait [#allocation3], 64  }
  0x33   :  { %403 = vsyncadd [#allocation3], 4294967232 }
  0x34   :  { %404 = dma.done.wait [#allocation5], 320  }
  0x35   :  { %405 = vsyncadd [#allocation5], 4294966976  ;;  %v411_v0 = vmov 0.0   ;;  %vm412_vm0 = vmmov 0   ;;  %vm77_vm1 = vcmask 1043456   ;;  %vm73_vm2 = vcmask 64512  }
  0x36   :  { %295 = vmatprep.subr.bf16.mxu0 %v411_v0  ;;  %297 = vmatprep.mubr.msk.bf16.mxu0 %vm412_vm0, %v411_v0  ;;  %v65_v1 = vld [vmem:[#allocation4] sm:$0xf]  ;;  %v64_v2 = vld [vmem:[#allocation2] sm:$0xf]  ;;  %v324_v4 = vld [vmem:[#allocation6] sm:$0xff]   ;;  %vm146_vm3 = vcmask 261120  }
  0x37   :  { %301 = vmatprep.subr.bf16.mxu1 %v411_v0  ;;  %305 = vmatprep.mubr.msk.bf16.mxu1 %vm412_vm0, %v411_v0  ;;  %v79_v3 = vsel %vm77_vm1, %v65_v1, 0  ;;  %v325_v5 = vld [vmem:[#allocation6 + $0x8] sm:$0xff]   ;;  %v327_v15 = vld [vmem:[%s517_s5 + $0x8] sm:$0xff]   ;;  %vm258_vm4 = vcmask 31744  }
  0x38   :  { %296 = vmatpush3.bf16.msra.mxu0 %v79_v3  ;;  %302 = vmatpush3.bf16.msra.mxu1 %v324_v4  ;;  %v277_v6 = vld [vmem:[%s514_s2] ss:$0 sm:$0xff] }
  0x39   :  { %309 = vmatprep.subr.bf16.mxu0 %v411_v0  ;;  %303 = vmatprep.subr.bf16.mxu1 %v411_v0  ;;  %v326_v14 = vld [vmem:[%s517_s5] sm:$0xff]  }
  0x3a   :  { %v279_v16 = vld [vmem:[%s516_s4] ss:$0 sm:$0xff] }
  0x3b   :  { %298 = vmatmul.mubr.msk.bf16.vlgmr.msra.gmra.mrb[0].mxu0 %vm73_vm2, %v64_v2  ;;  %v283_v24 = vld [vmem:[%s518_s6] ss:$0 sm:$0xff] }
  0x3c   :  { %313 = vmatprep.mubr.msk.bf16.mxu0 %vm412_vm0, %v411_v0  ;;  %304 = vmatpush3.bf16.msra.mxu1 %v325_v5 }
  0x3d   :  { %310 = vmatpush3.bf16.msra.mxu0 %v326_v14 }
  0x3e   :  { %311 = vmatprep.subr.bf16.mxu0 %v411_v0 }
  0x41   :  { %312 = vmatpush3.bf16.msra.mxu0 %v327_v15 }
 0x10e   :  { %v115_v7 = vpop.f32.mrb[0].mxu0 }
 0x10f   :  { %v116_v8 = vadd.f32 %v277_v6, %v115_v7  ;;  %v299_v9 = vpop.f32.mrb[1].mxu0 }
 0x110   :  { %v118_v10 = vpop.f32.mrb[2].mxu0 }
 0x111   :  { %328 = vtanh.f32 %v116_v8  ;;  %v300_v11 = vpop.f32.mrb[3].mxu0 }
 0x11b   :  { %v329_v12 = vpop.eup %328 }
 0x11c   :  { %v122_v13 = vpack.c.bf16 %v329_v12, %v329_v12 }
 0x11e   :  { %306 = vmatmul.mubr.msk.bf16.vlgmr.msra.gmra.mrb[0].mxu1 %vm146_vm3, %v122_v13 }
 0x1f1   :  { %v184_v17 = vpop.f32.mrb[0].mxu1 }
 0x1f2   :  { %v185_v18 = vadd.f32 %v279_v16, %v184_v17  ;;  %v307_v19 = vpop.f32.mrb[1].mxu1 }
 0x1f3   :  { %v187_v20 = vpop.f32.mrb[2].mxu1 }
 0x1f4   :  { %330 = vtanh.f32 %v185_v18  ;;  %v308_v21 = vpop.f32.mrb[3].mxu1 }
 0x1fe   :  { %v331_v22 = vpop.eup %330 }
 0x1ff   :  { %v191_v23 = vpack.c.bf16 %v331_v22, %v331_v22 }
 0x201   :  { %314 = vmatmul.mubr.msk.bf16.vlgmr.msra.gmra.mrb[4].mxu0 %vm146_vm3, %v191_v23 }
 0x2d4   :  { %v252_v25 = vpop.f32.mrb[4].mxu0 }
 0x2d5   :  { %v253_v26 = vadd.f32 %v283_v24, %v252_v25  ;;  %v315_v27 = vpop.f32.mrb[5].mxu0 }
 0x2d6   :  { %v255_v28 = vpop.f32.mrb[6].mxu0 }
 0x2d7   :  { %v316_v29 = vpop.f32.mrb[7].mxu0  ;;  %v259_v30 = vsel %vm258_vm4, %v253_v26, -inf }
 0x2d8   :  { %260 = vmax.xlane.f32.xlu0 %v259_v30 }
 0x365   :  { %v261_v31 = vpop.xlane.xlu0 %260 }
 0x366   :  { %v262_v32 = vsub.f32 %v253_v26, %v261_v31 }
 0x368   :  { %v263_v33 = vmul.f32 1.442695, %v262_v32 }
 0x36a   :  { %332 = vpow2.f32 %v263_v33 }
 0x374   :  { %v333_v34 = vpop.eup %332 }
 0x375   :  { %v265_v35 = vsel %vm258_vm4, %v333_v34, 0.0 }
 0x376   :  { %266 = vadd.xlane.f32.xlu0 %v265_v35 }
 0x403   :  { %v267_v36 = vpop.xlane.xlu0 %266 }
 0x404   :  { %334 = vrcp.f32 %v267_v36 }
 0x40e   :  { %v335_v37 = vpop.eup %334 }
 0x40f   :  { %v269_v38 = vmul.f32 %v335_v37, %v333_v34 }
 0x411   :  { %270 = vst.msk [vmem:[%s519_s7] sm:$0xff] %vm258_vm4, %v269_v38 }
 0x412   :  { %275 = vsyncpa [#allocation3], 1 }
 0x413   :  { %276 = vsyncpa [#allocation5], 1 }

</bundles_post_ra>
